<compile_context>
chip_gen: v5e
topology: v5e:2x2
jax: 0.10.0
libtpu: 0.0.40
codegen_flags: <defaults>
</compile_context>

<pallas_src>
import functools

import jax
import jax.numpy as jnp
from jax.experimental import pallas as pl
from jax.experimental.pallas import tpu as pltpu


def _cdiv(a: int, b: int) -> int:
    return (a + b - 1) // b


def _round_up(x: int, m: int) -> int:
    return _cdiv(x, m) * m


def _largest_divisor_at_most(n: int, cap: int) -> int:
    cap = max(1, min(n, cap))
    while n % cap:
        cap -= 1
    return cap


def _pick_tile(dim: int, max_tile: int, granule: int) -> int:
    """Padding-aware tile size.

    Returns the full dim (always layout-legal) when it fits under `max_tile`;
    otherwise a granule-multiple tile <= max_tile chosen to minimize the
    rounded-up extent (Pallas masks the tail block reads/writes).
    """
    if dim <= max_tile:
        return dim
    n0 = _cdiv(dim, max_tile)
    best_t, best_padded = None, None
    for nb in range(n0, n0 + 3):
        t = min(max_tile, _round_up(_cdiv(dim, nb), granule))
        padded = _round_up(dim, t)
        if best_padded is None or padded < best_padded or (
                padded == best_padded and t > best_t):
            best_t, best_padded = t, padded
    return best_t


# ----------------------------------------------------------------------------
# Kernels
# ----------------------------------------------------------------------------

def _make_multik_kernel(K: int, tk: int):
    """General tiled kernel: batch squeezed, K reduction on the last grid axis,
    f32 VMEM accumulator resident across K, K-tail masked only if needed."""
    k_rem = K % tk

    def kernel(a_ref, b_ref, o_ref, acc_ref):
        k = pl.program_id(3)

        @pl.when(k == 0)
        def _():
            acc_ref[...] = jnp.zeros_like(acc_ref)

        a = a_ref[...]
        b = b_ref[...]
        if k_rem:
            # Zero the K tail of BOTH operands (garbage in the padded region
            # could be Inf/NaN; 0*garbage would still poison the accumulator).
            valid = K - k * tk
            a = jnp.where(
                jax.lax.broadcasted_iota(jnp.int32, a.shape, 1) < valid, a, 0)
            b = jnp.where(
                jax.lax.broadcasted_iota(jnp.int32, b.shape, 0) < valid, b, 0)

        acc_ref[...] += jnp.dot(a, b, preferred_element_type=jnp.float32)

        @pl.when(k == pl.num_programs(3) - 1)
        def _():
            o_ref[...] = acc_ref[...].astype(o_ref.dtype)

    return kernel


def _singlek_kernel(a_ref, b_ref, o_ref):
    """Single K step: batch squeezed, direct write, no accumulator scratch."""
    o_ref[...] = jnp.dot(
        a_ref[...], b_ref[...], preferred_element_type=jnp.float32
    ).astype(o_ref.dtype)


def _batched_kernel(a_ref, b_ref, o_ref):
    """Small-problem fast path: TB batch elements per grid step, direct write."""
    o_ref[...] = jnp.einsum(
        "bmk,bkn->bmn", a_ref[...], b_ref[...],
        preferred_element_type=jnp.float32,
    ).astype(o_ref.dtype)


# ----------------------------------------------------------------------------
# Wrapper
# ----------------------------------------------------------------------------

@functools.partial(
    jax.jit,
    static_argnames=("tm_max", "tn_max", "tk_max", "vmem_budget_bytes"))
def batch_matmul(a: jax.Array, b: jax.Array, *,
                 tm_max: int = 512, tn_max: int = 512, tk_max=None,
                 vmem_budget_bytes: int = 12 * 1024 * 1024) -> jax.Array:
    """Equivalent of torch.bmm(a, b) for a:(B,M,K), b:(B,K,N), float dtypes."""
    assert a.ndim == 3 and b.ndim == 3, "bmm expects 3-D tensors"
    B, M, K = a.shape
    Bb, Kb, N = b.shape
    assert B == Bb and K == Kb, "incompatible batch matmul shapes"

    out_dtype = jnp.promote_types(a.dtype, b.dtype)
    if not jnp.issubdtype(out_dtype, jnp.floating):
        # TODO(synk): torch.bmm integer semantics (exact integer accumulate)
        # have no MXU equivalent (v7x MXU has no int modes); refuse rather than
        # silently accumulate in f32.
        raise NotImplementedError("batch_matmul: only floating dtypes supported")
    a = a.astype(out_dtype)
    b = b.astype(out_dtype)
    isz = jnp.dtype(out_dtype).itemsize

    if B == 0 or M == 0 or N == 0 or K == 0:
        return jnp.zeros((B, M, N), out_dtype)

    # --- padding-aware tile selection (no wrapper-side padding copies) ---
    tm_max = max(8, (tm_max // 8) * 8)
    tn_max = max(128, (tn_max // 128) * 128)
    tm = _pick_tile(M, tm_max, 8)       # second-minor dim: mult. of 8 or full
    tn = _pick_tile(N, tn_max, 128)     # minor dim: mult. of 128 or full

    # tk: as large as the VMEM budget allows (double-buffered A/B/out + f32 acc).
    fixed = 2 * tm * tn * isz + tm * tn * 4
    per_k = 2 * (tm + tn) * isz
    tk_cap = max(128, (vmem_budget_bytes - fixed) // per_k)
    if tk_max is not None:
        tk_cap = min(tk_cap, tk_max)
    tk_cap = max(128, (tk_cap // 128) * 128)
    tk = K if K <= tk_cap else _pick_tile(K, tk_cap, 128)

    nM, nN, nK = _cdiv(M, tm), _cdiv(N, tn), _cdiv(K, tk)
    flops = 2 * B * M * N * K

    vmem_limit = None
    if vmem_budget_bytes > (12 << 20):
        # Larger tiles than the cross-generation default: raise the scoped VMEM
        # limit (v5e default 16 MiB); stay well under v7x's 64 MiB physical.
        vmem_limit = int(min(vmem_budget_bytes + (4 << 20), 48 << 20))

    # --- small-problem fast path: several batches per grid step -------------
    single_block = (tm == M and tn == N and tk == K)
    TB = 1
    if single_block and B > 1:
        per_batch = 2 * (M * K + K * N) * isz + 2 * M * N * isz
        TB = _largest_divisor_at_most(
            B, max(1, vmem_budget_bytes // max(per_batch, 1)))

    if TB > 1:
        # TODO(synk): tiny-N outputs (<128 lanes) still use masked stores; a
        # lane-dense transposed layout would help but adds a wrapper transpose.
        return pl.pallas_call(
            _batched_kernel,
            out_shape=jax.ShapeDtypeStruct((B, M, N), out_dtype),
            grid_spec=pltpu.PrefetchScalarGridSpec(
                num_scalar_prefetch=0,
                grid=(B // TB,),
                in_specs=[
                    pl.BlockSpec((TB, M, K), lambda bi: (bi, 0, 0)),
                    pl.BlockSpec((TB, K, N), lambda bi: (bi, 0, 0)),
                ],
                out_specs=pl.BlockSpec((TB, M, N), lambda bi: (bi, 0, 0)),
            ),
            compiler_params=pltpu.CompilerParams(
                dimension_semantics=("parallel",),
                vmem_limit_bytes=vmem_limit),
            cost_estimate=pl.CostEstimate(
                flops=flops, transcendentals=0,
                bytes_accessed=B * (M * K + K * N + M * N) * isz),
        )(a, b)

    if nK == 1:
        # Single K step: direct write (no accumulator). Put the larger input
        # panel's block index constant along the innermost axis so Pallas skips
        # its re-DMA between consecutive grid steps.
        if M * K >= K * N:
            grid = (B, nM, nN)
            a_map = lambda bi, i, j: (bi, i, 0)
            b_map = lambda bi, i, j: (bi, 0, j)
            o_map = lambda bi, i, j: (bi, i, j)
            bytes_accessed = B * (M * K + K * N * nM + M * N) * isz
        else:
            grid = (B, nN, nM)
            a_map = lambda bi, j, i: (bi, i, 0)
            b_map = lambda bi, j, i: (bi, 0, j)
            o_map = lambda bi, j, i: (bi, i, j)
            bytes_accessed = B * (M * K * nN + K * N + M * N) * isz
        return pl.pallas_call(
            _singlek_kernel,
            out_shape=jax.ShapeDtypeStruct((B, M, N), out_dtype),
            grid_spec=pltpu.PrefetchScalarGridSpec(
                num_scalar_prefetch=0,
                grid=grid,
                in_specs=[
                    pl.BlockSpec((None, tm, K), a_map),
                    pl.BlockSpec((None, K, tn), b_map),
                ],
                out_specs=pl.BlockSpec((None, tm, tn), o_map),
            ),
            compiler_params=pltpu.CompilerParams(
                dimension_semantics=("parallel", "parallel", "parallel"),
                vmem_limit_bytes=vmem_limit),
            cost_estimate=pl.CostEstimate(
                flops=flops, transcendentals=0,
                bytes_accessed=bytes_accessed),
        )(a, b)

    # --- general tiled path: K reduction innermost + resident f32 accumulator
    return pl.pallas_call(
        _make_multik_kernel(K, tk),
        out_shape=jax.ShapeDtypeStruct((B, M, N), out_dtype),
        grid_spec=pltpu.PrefetchScalarGridSpec(
            num_scalar_prefetch=0,
            grid=(B, nM, nN, nK),
            in_specs=[
                pl.BlockSpec((None, tm, tk), lambda bi, i, j, k: (bi, i, k)),
                pl.BlockSpec((None, tk, tn), lambda bi, i, j, k: (bi, k, j)),
            ],
            out_specs=pl.BlockSpec((None, tm, tn), lambda bi, i, j, k: (bi, i, j)),
            scratch_shapes=[pltpu.VMEM((tm, tn), jnp.float32)],
        ),
        compiler_params=pltpu.CompilerParams(
            dimension_semantics=("parallel", "parallel", "parallel", "arbitrary"),
            vmem_limit_bytes=vmem_limit),
        cost_estimate=pl.CostEstimate(
            flops=flops, transcendentals=0,
            bytes_accessed=B * (M * K * nN + K * N * nM + M * N) * isz),
    )(a, b)


if __name__ == "__main__":
    key = jax.random.PRNGKey(0)
    k1, k2, k3, k4, k5, k6 = jax.random.split(key, 6)

    # 1) Small shapes consistent with torch.bmm (fast batched path).
    B, M, K, N = 2, 8, 32, 16
    a = jax.random.normal(k1, (B, M, K), dtype=jnp.float32)
    b = jax.random.normal(k2, (B, K, N), dtype=jnp.float32)
    out = jax.block_until_ready(batch_matmul(a, b))
    ref = jnp.einsum("bmk,bkn->bmn", a, b, precision=jax.lax.Precision.HIGHEST)
    assert out.shape == (B, M, N)
    assert jnp.allclose(out, ref, atol=1e-3, rtol=1e-3)

    # 2) Ragged shape, single-K direct-write path (no padding, no accumulator).
    B2, M2, K2, N2 = 2, 384, 1100, 260
    a2 = jax.random.normal(k3, (B2, M2, K2), dtype=jnp.float32)
    b2 = jax.random.normal(k4, (B2, K2, N2), dtype=jnp.float32)
    out2 = jax.block_until_ready(batch_matmul(a2, b2))
    ref2 = jnp.einsum("bmk,bkn->bmn", a2, b2, precision=jax.lax.Precision.HIGHEST)
    assert out2.shape == (B2, M2, N2)
    assert jnp.allclose(out2, ref2, atol=5e-2, rtol=5e-3)

    # 3) Force the multi-K accumulator path with an in-kernel K-tail mask by
    #    shrinking the tile caps (exercises ragged M/N tails as well).
    B3, M3, K3, N3 = 2, 200, 600, 300
    a3 = jax.random.normal(k5, (B3, M3, K3), dtype=jnp.float32)
    b3 = jax.random.normal(k6, (B3, K3, N3), dtype=jnp.float32)
    out3 = jax.block_until_ready(
        batch_matmul(a3, b3, tm_max=128, tn_max=128, tk_max=256))
    ref3 = jnp.einsum("bmk,bkn->bmn", a3, b3, precision=jax.lax.Precision.HIGHEST)
    assert out3.shape == (B3, M3, N3)
    assert jnp.allclose(out3, ref3, atol=5e-2, rtol=1e-2)

    print("KERNEL_OK")
</pallas_src>

<mosaic_0001>
module attributes {stable_mosaic.version = 11 : i64} {
  func.func @_batched_kernel(%arg0: i32, %arg1: memref<2x8x32xf32, #tpu.memory_space<vmem>>, %arg2: memref<2x32x16xf32, #tpu.memory_space<vmem>>, %arg3: memref<2x8x16xf32, #tpu.memory_space<vmem>>) attributes {dimension_semantics = [#tpu.dimension_semantics<parallel>], iteration_bounds = array<i64: 1>, scalar_prefetch = 0 : i64, scratch_operands = 0 : i64, tpu.core_type = #tpu.core_type<tc>, window_params = [{transform_indices = @transform_0, window_bounds = array<i64: 2, 8, 32>}, {transform_indices = @transform_1, window_bounds = array<i64: 2, 32, 16>}, {transform_indices = @transform_2, window_bounds = array<i64: 2, 8, 16>}]} {
    %c0 = arith.constant 0 : index
    %c0_0 = arith.constant 0 : index
    %c0_1 = arith.constant 0 : index
    %0 = vector.load %arg1[%c0, %c0_0, %c0_1] : memref<2x8x32xf32, #tpu.memory_space<vmem>>, vector<2x8x32xf32>
    %c0_2 = arith.constant 0 : index
    %c0_3 = arith.constant 0 : index
    %c0_4 = arith.constant 0 : index
    %1 = vector.load %arg2[%c0_2, %c0_3, %c0_4] : memref<2x32x16xf32, #tpu.memory_space<vmem>>, vector<2x32x16xf32>
    "tpu.trace_start"() <{level = 10 : i32, message = "bmk,bkn->bmn"}> : () -> ()
    %cst = arith.constant dense<0.000000e+00> : vector<2x8x16xf32>
    %2 = tpu.matmul %0, %1, %cst {dimension_numbers = #tpu.dot_dimension_numbers<[2], [1], [1], [2], [0, 0, 0, 1, 1, 2], [0], [0]>} : vector<2x8x32xf32>, vector<2x32x16xf32>, vector<2x8x16xf32> -> vector<2x8x16xf32>
    "tpu.trace_stop"() : () -> ()
    %c0_5 = arith.constant 0 : index
    %c0_6 = arith.constant 0 : index
    %c0_7 = arith.constant 0 : index
    %3 = vector.load %arg3[%c0_5, %c0_6, %c0_7] : memref<2x8x16xf32, #tpu.memory_space<vmem>>, vector<2x8x16xf32>
    tpu.vector_store %arg3[%c0_5, %c0_6, %c0_7], %2 {strides = array<i32>} : memref<2x8x16xf32, #tpu.memory_space<vmem>>, vector<2x8x16xf32>,
    return
  }
  func.func @transform_0(%arg0: i32) -> (i32, i32, i32) {
    %c0_i32 = arith.constant 0 : i32
    %c0_i32_0 = arith.constant 0 : i32
    %c0_i32_1 = arith.constant 0 : i32
    return %arg0, %c0_i32, %c0_i32_0 : i32, i32, i32
  }
  func.func @transform_1(%arg0: i32) -> (i32, i32, i32) {
    %c0_i32 = arith.constant 0 : i32
    %c0_i32_0 = arith.constant 0 : i32
    %c0_i32_1 = arith.constant 0 : i32
    return %arg0, %c0_i32, %c0_i32_0 : i32, i32, i32
  }
  func.func @transform_2(%arg0: i32) -> (i32, i32, i32) {
    %c0_i32 = arith.constant 0 : i32
    %c0_i32_0 = arith.constant 0 : i32
    %c0_i32_1 = arith.constant 0 : i32
    return %arg0, %c0_i32, %c0_i32_0 : i32, i32, i32
  }
}

</mosaic_0001>

<bundles_post_ra>
// kernel: batch_matmul.1
= control target key start
LH: loop header
LB: loop body
LE: loop exit
PB: predicated region body
PF: predicated region fallthrough
CT: control target
= control target key end

     0   :  { %s172_s0 = inlined_call_operand.vmem [shape: f32[2,8,32], index: 0, kind: input, shape index: {}]   ;;  %s173_s1 = inlined_call_operand.vmem [shape: f32[2,32,16], index: 1, kind: input, shape index: {}]   ;;  %s174_s2 = inlined_call_operand.hbm [shape: f32[2,8,16], index: 2, kind: output, shape index: {}]  }
   0x1   :  { %v17_v0 = vld [vmem:[%s173_s1 + $0x18] sm:$0xff]  ;;  %v16_v2 = vld [vmem:[%s173_s1 + $0x10] sm:$0xff]  ;;  %v15_v4 = vld [vmem:[%s173_s1 + $0x8] sm:$0xff] }
   0x2   :  { %v21_v1 = vld [vmem:[%s173_s1 + $0x38] sm:$0xff]  ;;  %38 = vmatpush.msra.mxu0 %v17_v0  ;;  %v20_v3 = vld [vmem:[%s173_s1 + $0x30] sm:$0xff]  ;;  %v19_v5 = vld [vmem:[%s173_s1 + $0x28] sm:$0xff] }
   0x3   :  { %61 = vmatpush.msra.mxu1 %v21_v1 }
   0x4   :  { %39 = vmatpush.msra.mxu0 %v16_v2 }
   0x5   :  { %62 = vmatpush.msra.mxu1 %v20_v3 }
   0x6   :  { %7 = vsyncpa [#allocation3], 0  ;;  %v14_v6 = vld [vmem:[%s173_s1] sm:$0xff]  ;;  %40 = vmatpush.msra.mxu0 %v15_v4  ;;  %vm22_vm0 = vcmask 261120   ;;  %v13_v9 = vld [vmem:[%s172_s0 + $0x8] sm:$0xff]  ;;  %s121_s29 = smov [#allocation2]  }
   0x7   :  { %v18_v7 = vld [vmem:[%s173_s1 + $0x20] sm:$0xff]  ;;  %63 = vmatpush.msra.mxu1 %v19_v5  ;;  %s76_s30 = sshll.u32 %s121_s29, 4  ;;  %s78_s1 = sshll.u32 %s174_s2, 4  ;;  %vm69_vm1 = vcmask 130048   ;;  %s77_s30 = int_to_ptr.vmem [resolvable:$true] %s76_s30  ;;  %s79_s1 = int_to_ptr.hbm [resolvable:$true] %s78_s1 }
   0x8   :  { %v12_v8 = vld [vmem:[%s172_s0] sm:$0xff]  ;;  %41 = vmatpush.msra.mxu0 %v14_v6  ;;  %s122_s5 = smov 128   ;;  %s123_s6 = smov 8  }
   0x9   :  { %64 = vmatpush.msra.mxu1 %v18_v7  ;;  %90 = vmatmul.msk.f32.vlgmr.msra.gmra.mxu0 %vm22_vm0, %v12_v8 }
   0xa   :  { %91 = vmatmul.msk.f32.vlgmr.msra.gmra.mxu1 %vm22_vm0, %v13_v9 }
  0x86   :  { %v43_v10 = vpop.f32.mrf.mxu0 }
  0x87   :  { %v66_v11 = vpop.f32.mrf.mxu1  ;;  %70 = vst.msk [vmem:[#allocation2] sm:$0xff] %vm69_vm1, %v43_v10 }
  0x88   :  { %71 = vst.msk [vmem:[#allocation2 + $0x8] sm:$0xff] %vm69_vm1, %v66_v11 }
  0x89   :  { %84 = dma.vmem_to_hbm [thread:$0]  %s77_s30, 256, %s79_s1, [#allocation3], %s122_s5, %s122_s5, %s123_s6  }
  0x8a   :  { %119 = dma.done.wait [#allocation3], 256  }
  0x8b   :  { %120 = vsyncadd [#allocation3], 4294967040 }
  0x8c   :  { %89 = vsyncpa [#allocation3], 1 }

</bundles_post_ra>
